<compile_context>
chip_gen: v6e
topology: v6e:2x2x1
jax: 0.10.0
libtpu: 0.0.40
codegen_flags: <defaults>
</compile_context>

<pallas_src>
import functools

import jax
import jax.numpy as jnp
from jax.experimental import pallas as pl
from jax.experimental.pallas import tpu as pltpu


def _round_up(x, m):
    return ((x + m - 1) // m) * m


def _cdiv(a, b):
    return -(-a // b)


# ----------------------------------------------------------------------------
# Kernels
# ----------------------------------------------------------------------------
def _mlp_logits(obs_ref, w1_ref, b1_ref, w2_ref, b2_ref, w3_ref, b3_ref):
    wdt = w1_ref.dtype  # f32 by default; bf16 if use_bf16_matmul=True
    x = jnp.tanh(
        jnp.dot(obs_ref[...].astype(wdt), w1_ref[...],
                preferred_element_type=jnp.float32) + b1_ref[...]
    )
    x = jnp.tanh(
        jnp.dot(x.astype(wdt), w2_ref[...],
                preferred_element_type=jnp.float32) + b2_ref[...]
    )
    return (
        jnp.dot(x.astype(wdt), w3_ref[...],
                preferred_element_type=jnp.float32) + b3_ref[...]
    )


def _actor_logits_kernel(obs_ref, w1_ref, b1_ref, w2_ref, b2_ref, w3_ref,
                         b3_ref, logits_ref):
    # Inference / sampling path (act is None): no log-softmax / gather work.
    logits_ref[...] = _mlp_logits(obs_ref, w1_ref, b1_ref, w2_ref, b2_ref,
                                  w3_ref, b3_ref)


def _actor_logits_logp_kernel(obs_ref, w1_ref, b1_ref, w2_ref, b2_ref, w3_ref,
                              b3_ref, act_ref, logits_ref, logp_a_ref, *,
                              act_dim):
    logits = _mlp_logits(obs_ref, w1_ref, b1_ref, w2_ref, b2_ref, w3_ref,
                         b3_ref)
    logits_ref[...] = logits

    # Mask padded lane columns so they do not perturb the softmax normalizer.
    lane = jax.lax.broadcasted_iota(jnp.int32, logits.shape, 1)
    masked = jnp.where(lane < act_dim, logits, jnp.float32(-1e30))

    # Categorical(logits=...).log_prob(a) == log_softmax(logits)[a]
    m = jnp.max(masked, axis=-1, keepdims=True)
    z = masked - m
    lse = jnp.log(jnp.sum(jnp.exp(z), axis=-1, keepdims=True))
    logp_all = z - lse

    # Fused gather: one-hot select on the lane axis, then cross-lane row sum.
    act = act_ref[...]                                    # (tb, 1) int32
    sel = jnp.where(lane == act, logp_all, jnp.float32(0.0))
    logp_a_ref[...] = jnp.sum(sel, axis=-1, keepdims=True)  # (tb, 1)


# ----------------------------------------------------------------------------
# Tiling / VMEM budgeting
# ----------------------------------------------------------------------------
def _pick_tile(B, obs_dim, hid_pad, act_pad, batch_tile, elem_bytes):
    # Resident (single-buffered) weight + bias footprint.
    resident = (elem_bytes * (obs_dim * hid_pad + hid_pad * hid_pad
                              + hid_pad * act_pad)
                + 4 * (2 * hid_pad + act_pad))
    try:
        vmem_cap = pltpu.get_tpu_info().vmem_capacity_bytes
    except Exception:
        vmem_cap = 64 << 20          # conservative (v7x per-TensorCore)
    budget = int(vmem_cap * 0.75)

    # Per-row bytes that scale with the batch tile: double-buffered obs block,
    # double-buffered logits output, f32 hidden/logits intermediates, tiny
    # act / logp_a blocks.
    per_row = (2 * elem_bytes * obs_dim
               + 2 * 4 * act_pad
               + 4 * (2 * hid_pad + act_pad)
               + 32)

    tb_budget = max(8, (budget - resident) // per_row)
    tb = min(_round_up(batch_tile, 8), tb_budget, _round_up(B, 8))
    tb = max(8, (tb // 8) * 8)

    # v7x megacore: make the batch grid shardable across 2 TensorCores when
    # there is enough batch to split (free on v5e/v6e).
    if B > 8 and _cdiv(_round_up(B, 8), tb) < 2:
        tb = max(8, _round_up(_cdiv(B, 2), 8))

    vmem_limit = int(min(vmem_cap,
                         max(32 << 20, resident + tb * per_row + (4 << 20))))
    return tb, vmem_limit


# ----------------------------------------------------------------------------
# Wrapper
# ----------------------------------------------------------------------------
def discrete_mlp_actor_forward(obs, params, act=None, *, batch_tile=1024,
                               use_bf16_matmul=False):
    """Forward pass of DiscreteMLPActor.

    Returns (logits, logp_a).  `logits` parameterize Categorical(logits=...);
    `logp_a` is None if act is None.
    """
    w1, b1, w2, b2, w3, b3 = params
    B, obs_dim = obs.shape
    hid_dim = w1.shape[1]
    act_dim = w3.shape[1]

    # --- lane padding (zero-pad: exact-math preserving, see kernel mask) ----
    hid_pad = _round_up(hid_dim, 128)
    act_pad = _round_up(act_dim, 128)

    w_dtype = jnp.bfloat16 if use_bf16_matmul else jnp.float32
    elem_bytes = 2 if use_bf16_matmul else 4

    w1p = jnp.pad(w1, ((0, 0), (0, hid_pad - hid_dim))).astype(w_dtype)
    b1p = jnp.pad(b1, (0, hid_pad - hid_dim)).reshape(1, hid_pad)
    w2p = jnp.pad(w2, ((0, hid_pad - hid_dim),
                       (0, hid_pad - hid_dim))).astype(w_dtype)
    b2p = jnp.pad(b2, (0, hid_pad - hid_dim)).reshape(1, hid_pad)
    w3p = jnp.pad(w3, ((0, hid_pad - hid_dim),
                       (0, act_pad - act_dim))).astype(w_dtype)
    b3p = jnp.pad(b3, (0, act_pad - act_dim)).reshape(1, act_pad)

    # --- batch tiling sized against this chip's VMEM -------------------------
    tb, vmem_limit = _pick_tile(B, obs_dim, hid_pad, act_pad, batch_tile,
                                elem_bytes)
    b_pad = _cdiv(B, tb) * tb
    obs_p = obs.astype(w_dtype)
    if b_pad != B:
        obs_p = jnp.pad(obs_p, ((0, b_pad - B), (0, 0)))
    grid = (b_pad // tb,)

    obs_spec = pl.BlockSpec((tb, obs_dim), lambda i: (i, 0))

    def resident(shape):
        # Constant index_map -> single-buffered VMEM residency.
        try:
            return pl.BlockSpec(shape, lambda i: (0, 0),
                                pipeline_mode=pl.Buffered(1))
        except TypeError:  # older Pallas without pipeline_mode kwarg
            return pl.BlockSpec(shape, lambda i: (0, 0))

    in_specs = [
        obs_spec,
        resident((obs_dim, hid_pad)), resident((1, hid_pad)),
        resident((hid_pad, hid_pad)), resident((1, hid_pad)),
        resident((hid_pad, act_pad)), resident((1, act_pad)),
    ]
    logits_spec = pl.BlockSpec((tb, act_pad), lambda i: (i, 0))

    flops = 2 * b_pad * (obs_dim * hid_pad + hid_pad * hid_pad
                         + hid_pad * act_pad)
    weight_bytes = elem_bytes * (obs_dim * hid_pad + hid_pad * hid_pad
                                 + hid_pad * act_pad) + 4 * (2 * hid_pad
                                                             + act_pad)
    compiler_params = pltpu.CompilerParams(
        dimension_semantics=("parallel",),
        vmem_limit_bytes=vmem_limit,
    )

    if act is None:
        cost = pl.CostEstimate(
            flops=flops,
            transcendentals=b_pad * 2 * hid_pad,
            bytes_accessed=weight_bytes
            + elem_bytes * b_pad * obs_dim + 4 * b_pad * act_pad,
        )
        logits_p = pl.pallas_call(
            _actor_logits_kernel,
            out_shape=jax.ShapeDtypeStruct((b_pad, act_pad), jnp.float32),
            grid=grid,
            in_specs=in_specs,
            out_specs=logits_spec,
            compiler_params=compiler_params,
            cost_estimate=cost,
        )(obs_p, w1p, b1p, w2p, b2p, w3p, b3p)
        return logits_p[:B, :act_dim], None

    # --- training path: fused log_softmax + gather ---------------------------
    act_p = act.astype(jnp.int32).reshape(B, 1)
    if b_pad != B:
        act_p = jnp.pad(act_p, ((0, b_pad - B), (0, 0)))

    cost = pl.CostEstimate(
        flops=flops,
        transcendentals=b_pad * (2 * hid_pad + act_pad),
        bytes_accessed=weight_bytes
        + elem_bytes * b_pad * obs_dim          # obs in
        + 4 * b_pad                             # act in
        + 4 * b_pad * act_pad + 4 * b_pad,      # logits + logp_a out
    )

    logits_p, logp_a_p = pl.pallas_call(
        functools.partial(_actor_logits_logp_kernel, act_dim=act_dim),
        out_shape=(
            jax.ShapeDtypeStruct((b_pad, act_pad), jnp.float32),
            jax.ShapeDtypeStruct((b_pad, 1), jnp.float32),
        ),
        grid=grid,
        in_specs=in_specs + [pl.BlockSpec((tb, 1), lambda i: (i, 0))],
        out_specs=(logits_spec, pl.BlockSpec((tb, 1), lambda i: (i, 0))),
        compiler_params=compiler_params,
        cost_estimate=cost,
    )(obs_p, w1p, b1p, w2p, b2p, w3p, b3p, act_p)

    logits = logits_p[:B, :act_dim]
    logp_a = logp_a_p[:B, 0]
    return logits, logp_a


# ----------------------------------------------------------------------------
# Params / reference / test
# ----------------------------------------------------------------------------
def init_params(key, obs_dim, hid_dim, act_dim):
    """Deterministic parameter init (PyTorch Linear-like uniform bounds).

    Weights are returned already transposed to [in_dim, out_dim]."""
    ks = jax.random.split(key, 6)

    def linear(kw, kb, fan_in, fan_out):
        bound = 1.0 / jnp.sqrt(fan_in)
        w = jax.random.uniform(kw, (fan_in, fan_out), jnp.float32, -bound, bound)
        b = jax.random.uniform(kb, (fan_out,), jnp.float32, -bound, bound)
        return w, b

    w1, b1 = linear(ks[0], ks[1], obs_dim, hid_dim)
    w2, b2 = linear(ks[2], ks[3], hid_dim, hid_dim)
    w3, b3 = linear(ks[4], ks[5], hid_dim, act_dim)
    return (w1, b1, w2, b2, w3, b3)


def _reference(obs, params, act):
    w1, b1, w2, b2, w3, b3 = params
    x = jnp.tanh(obs @ w1 + b1)
    x = jnp.tanh(x @ w2 + b2)
    logits = x @ w3 + b3
    logp_all = jax.nn.log_softmax(logits, axis=-1)
    logp_a = jnp.take_along_axis(logp_all, act[:, None], axis=-1)[:, 0]
    return logits, logp_a


if __name__ == "__main__":
    key = jax.random.PRNGKey(0)
    k_obs, k_act, k_params = jax.random.split(key, 3)

    B, obs_dim, hid_dim, act_dim = 2, 16, 32, 6

    obs = jax.random.normal(k_obs, (B, obs_dim), jnp.float32)
    act = jax.random.randint(k_act, (B,), 0, act_dim)
    params = init_params(k_params, obs_dim, hid_dim, act_dim)

    # act is not None path: logits + log_prob(act), gather fused in-kernel.
    logits, logp_a = discrete_mlp_actor_forward(obs, params, act)
    logits = jax.block_until_ready(logits)
    logp_a = jax.block_until_ready(logp_a)

    ref_logits, ref_logp = _reference(obs, params, act)
    assert jnp.allclose(logits, ref_logits, atol=1e-5), "logits mismatch"
    assert jnp.allclose(logp_a, ref_logp, atol=1e-5), "logp mismatch"

    # act is None path: logits only (no log-softmax / gather work in-kernel).
    logits_none, logp_none = discrete_mlp_actor_forward(obs, params, None)
    logits_none = jax.block_until_ready(logits_none)
    assert logp_none is None
    assert jnp.allclose(logits_none, ref_logits, atol=1e-5), "logits (no-act) mismatch"

    print("KERNEL_OK")
</pallas_src>

<mosaic_0001>
module attributes {stable_mosaic.version = 11 : i64} {
  func.func @_actor_logits_logp_kernel(%arg0: i32, %arg1: memref<8x16xf32, #tpu.memory_space<vmem>>, %arg2: memref<16x128xf32, #tpu.memory_space<vmem>>, %arg3: memref<1x128xf32, #tpu.memory_space<vmem>>, %arg4: memref<128x128xf32, #tpu.memory_space<vmem>>, %arg5: memref<1x128xf32, #tpu.memory_space<vmem>>, %arg6: memref<128x128xf32, #tpu.memory_space<vmem>>, %arg7: memref<1x128xf32, #tpu.memory_space<vmem>>, %arg8: memref<8x1xi32, #tpu.memory_space<vmem>>, %arg9: memref<8x128xf32, #tpu.memory_space<vmem>>, %arg10: memref<8x1xf32, #tpu.memory_space<vmem>>) attributes {dimension_semantics = [#tpu.dimension_semantics<parallel>], iteration_bounds = array<i64: 1>, scalar_prefetch = 0 : i64, scratch_operands = 0 : i64, tpu.core_type = #tpu.core_type<tc>, window_params = [{transform_indices = @transform_0, window_bounds = array<i64: 8, 16>}, {pipeline_mode = #tpu.pipeline_mode<synchronous>, transform_indices = @transform_1, window_bounds = array<i64: 16, 128>}, {pipeline_mode = #tpu.pipeline_mode<synchronous>, transform_indices = @transform_2, window_bounds = array<i64: 1, 128>}, {pipeline_mode = #tpu.pipeline_mode<synchronous>, transform_indices = @transform_3, window_bounds = array<i64: 128, 128>}, {pipeline_mode = #tpu.pipeline_mode<synchronous>, transform_indices = @transform_4, window_bounds = array<i64: 1, 128>}, {pipeline_mode = #tpu.pipeline_mode<synchronous>, transform_indices = @transform_5, window_bounds = array<i64: 128, 128>}, {pipeline_mode = #tpu.pipeline_mode<synchronous>, transform_indices = @transform_6, window_bounds = array<i64: 1, 128>}, {transform_indices = @transform_7, window_bounds = array<i64: 8, 1>}, {transform_indices = @transform_8, window_bounds = array<i64: 8, 128>}, {transform_indices = @transform_9, window_bounds = array<i64: 8, 1>}]} {
    %c0 = arith.constant 0 : index
    %c0_0 = arith.constant 0 : index
    %0 = vector.load %arg1[%c0, %c0_0] : memref<8x16xf32, #tpu.memory_space<vmem>>, vector<8x16xf32>
    %c0_1 = arith.constant 0 : index
    %c0_2 = arith.constant 0 : index
    %1 = vector.load %arg2[%c0_1, %c0_2] : memref<16x128xf32, #tpu.memory_space<vmem>>, vector<16x128xf32>
    %cst = arith.constant dense<0.000000e+00> : vector<8x128xf32>
    %2 = tpu.matmul %0, %1, %cst {dimension_numbers = #tpu.dot_dimension_numbers<[1], [0], [0], [1], [0, 0, 1, 1], [], []>} : vector<8x16xf32>, vector<16x128xf32>, vector<8x128xf32> -> vector<8x128xf32>
    %c0_3 = arith.constant 0 : index
    %c0_4 = arith.constant 0 : index
    %3 = vector.load %arg3[%c0_3, %c0_4] : memref<1x128xf32, #tpu.memory_space<vmem>>, vector<1x128xf32>
    %4 = vector.broadcast %3 : vector<1x128xf32> to vector<8x128xf32>
    %5 = arith.addf %2, %4 : vector<8x128xf32>
    %6 = math.tanh %5 : vector<8x128xf32>
    %c0_5 = arith.constant 0 : index
    %c0_6 = arith.constant 0 : index
    %7 = vector.load %arg4[%c0_5, %c0_6] : memref<128x128xf32, #tpu.memory_space<vmem>>, vector<128x128xf32>
    %cst_7 = arith.constant dense<0.000000e+00> : vector<8x128xf32>
    %8 = tpu.matmul %6, %7, %cst_7 {dimension_numbers = #tpu.dot_dimension_numbers<[1], [0], [0], [1], [0, 0, 1, 1], [], []>} : vector<8x128xf32>, vector<128x128xf32>, vector<8x128xf32> -> vector<8x128xf32>
    %c0_8 = arith.constant 0 : index
    %c0_9 = arith.constant 0 : index
    %9 = vector.load %arg5[%c0_8, %c0_9] : memref<1x128xf32, #tpu.memory_space<vmem>>, vector<1x128xf32>
    %10 = vector.broadcast %9 : vector<1x128xf32> to vector<8x128xf32>
    %11 = arith.addf %8, %10 : vector<8x128xf32>
    %12 = math.tanh %11 : vector<8x128xf32>
    %c0_10 = arith.constant 0 : index
    %c0_11 = arith.constant 0 : index
    %13 = vector.load %arg6[%c0_10, %c0_11] : memref<128x128xf32, #tpu.memory_space<vmem>>, vector<128x128xf32>
    %cst_12 = arith.constant dense<0.000000e+00> : vector<8x128xf32>
    %14 = tpu.matmul %12, %13, %cst_12 {dimension_numbers = #tpu.dot_dimension_numbers<[1], [0], [0], [1], [0, 0, 1, 1], [], []>} : vector<8x128xf32>, vector<128x128xf32>, vector<8x128xf32> -> vector<8x128xf32>
    %c0_13 = arith.constant 0 : index
    %c0_14 = arith.constant 0 : index
    %15 = vector.load %arg7[%c0_13, %c0_14] : memref<1x128xf32, #tpu.memory_space<vmem>>, vector<1x128xf32>
    %16 = vector.broadcast %15 : vector<1x128xf32> to vector<8x128xf32>
    %17 = arith.addf %14, %16 : vector<8x128xf32>
    %c0_15 = arith.constant 0 : index
    %c0_16 = arith.constant 0 : index
    %18 = vector.load %arg9[%c0_15, %c0_16] : memref<8x128xf32, #tpu.memory_space<vmem>>, vector<8x128xf32>
    tpu.vector_store %arg9[%c0_15, %c0_16], %17 {strides = array<i32>} : memref<8x128xf32, #tpu.memory_space<vmem>>, vector<8x128xf32>,
    %19 = tpu.iota {dimensions = array<i32: 1>} : vector<8x128xi32>
    %c6_i32 = arith.constant 6 : i32
    %20 = vector.broadcast %c6_i32 : i32 to vector<8x128xi32>
    %21 = arith.cmpi slt, %19, %20 : vector<8x128xi32>
    %cst_17 = arith.constant -1.000000e+30 : f32
    %22 = vector.broadcast %cst_17 : f32 to vector<8x128xf32>
    %23 = arith.select %21, %17, %22 : vector<8x128xi1>, vector<8x128xf32>
    %cst_18 = arith.constant dense<0xFF800000> : vector<8xf32>
    %24 = vector.multi_reduction <maximumf>, %23, %cst_18 [1] : vector<8x128xf32> to vector<8xf32>
    %25 = vector.shape_cast %24 : vector<8xf32> to vector<8x1xf32>
    %26 = vector.broadcast %25 : vector<8x1xf32> to vector<8x128xf32>
    %27 = arith.subf %23, %26 : vector<8x128xf32>
    %28 = math.exp %27 : vector<8x128xf32>
    %cst_19 = arith.constant dense<0.000000e+00> : vector<8xf32>
    %29 = vector.multi_reduction <add>, %28, %cst_19 [1] : vector<8x128xf32> to vector<8xf32>
    %30 = vector.shape_cast %29 : vector<8xf32> to vector<8x1xf32>
    %31 = math.log %30 : vector<8x1xf32>
    %32 = vector.broadcast %31 : vector<8x1xf32> to vector<8x128xf32>
    %33 = arith.subf %27, %32 : vector<8x128xf32>
    %c0_20 = arith.constant 0 : index
    %c0_21 = arith.constant 0 : index
    %34 = vector.load %arg8[%c0_20, %c0_21] : memref<8x1xi32, #tpu.memory_space<vmem>>, vector<8x1xi32>
    %35 = vector.broadcast %34 : vector<8x1xi32> to vector<8x128xi32>
    %36 = arith.cmpi eq, %19, %35 : vector<8x128xi32>
    %cst_22 = arith.constant 0.000000e+00 : f32
    %37 = vector.broadcast %cst_22 : f32 to vector<8x128xf32>
    %38 = arith.select %36, %33, %37 : vector<8x128xi1>, vector<8x128xf32>
    %cst_23 = arith.constant dense<0.000000e+00> : vector<8xf32>
    %39 = vector.multi_reduction <add>, %38, %cst_23 [1] : vector<8x128xf32> to vector<8xf32>
    %40 = vector.shape_cast %39 : vector<8xf32> to vector<8x1xf32>
    %c0_24 = arith.constant 0 : index
    %c0_25 = arith.constant 0 : index
    %41 = vector.load %arg10[%c0_24, %c0_25] : memref<8x1xf32, #tpu.memory_space<vmem>>, vector<8x1xf32>
    tpu.vector_store %arg10[%c0_24, %c0_25], %40 {strides = array<i32>} : memref<8x1xf32, #tpu.memory_space<vmem>>, vector<8x1xf32>,
    return
  }
  func.func @transform_0(%arg0: i32) -> (i32, i32) {
    %c0_i32 = arith.constant 0 : i32
    %c0_i32_0 = arith.constant 0 : i32
    return %arg0, %c0_i32 : i32, i32
  }
  func.func @transform_1(%arg0: i32) -> (i32, i32) {
    %c0_i32 = arith.constant 0 : i32
    %c0_i32_0 = arith.constant 0 : i32
    %c0_i32_1 = arith.constant 0 : i32
    return %c0_i32, %c0_i32_0 : i32, i32
  }
  func.func @transform_2(%arg0: i32) -> (i32, i32) {
    %c0_i32 = arith.constant 0 : i32
    %c0_i32_0 = arith.constant 0 : i32
    %c0_i32_1 = arith.constant 0 : i32
    return %c0_i32, %c0_i32_0 : i32, i32
  }
  func.func @transform_3(%arg0: i32) -> (i32, i32) {
    %c0_i32 = arith.constant 0 : i32
    %c0_i32_0 = arith.constant 0 : i32
    %c0_i32_1 = arith.constant 0 : i32
    return %c0_i32, %c0_i32_0 : i32, i32
  }
  func.func @transform_4(%arg0: i32) -> (i32, i32) {
    %c0_i32 = arith.constant 0 : i32
    %c0_i32_0 = arith.constant 0 : i32
    %c0_i32_1 = arith.constant 0 : i32
    return %c0_i32, %c0_i32_0 : i32, i32
  }
  func.func @transform_5(%arg0: i32) -> (i32, i32) {
    %c0_i32 = arith.constant 0 : i32
    %c0_i32_0 = arith.constant 0 : i32
    %c0_i32_1 = arith.constant 0 : i32
    return %c0_i32, %c0_i32_0 : i32, i32
  }
  func.func @transform_6(%arg0: i32) -> (i32, i32) {
    %c0_i32 = arith.constant 0 : i32
    %c0_i32_0 = arith.constant 0 : i32
    %c0_i32_1 = arith.constant 0 : i32
    return %c0_i32, %c0_i32_0 : i32, i32
  }
  func.func @transform_7(%arg0: i32) -> (i32, i32) {
    %c0_i32 = arith.constant 0 : i32
    %c0_i32_0 = arith.constant 0 : i32
    return %arg0, %c0_i32 : i32, i32
  }
  func.func @transform_8(%arg0: i32) -> (i32, i32) {
    %c0_i32 = arith.constant 0 : i32
    %c0_i32_0 = arith.constant 0 : i32
    return %arg0, %c0_i32 : i32, i32
  }
  func.func @transform_9(%arg0: i32) -> (i32, i32) {
    %c0_i32 = arith.constant 0 : i32
    %c0_i32_0 = arith.constant 0 : i32
    return %arg0, %c0_i32 : i32, i32
  }
}

</mosaic_0001>

<bundles_post_ra>
// kernel: tpu_custom_call.1
= control target key start
LH: loop header
LB: loop body
LE: loop exit
PB: predicated region body
PF: predicated region fallthrough
CT: control target
= control target key end

     0   :  { %15 = vsyncpa [#allocation3], 0  ;;  %s742_s0 = inlined_call_operand.vmem [shape: f32[8,16], index: 0, kind: input, shape index: {}]   ;;  %s743_s1 = inlined_call_operand.hbm [shape: f32[16,128], index: 1, kind: input, shape index: {}]   ;;  %s744_s2 = inlined_call_operand.vmem [shape: f32[1,128], index: 2, kind: input, shape index: {}]   ;;  %s745_s3 = inlined_call_operand.hbm [shape: f32[128,128], index: 3, kind: input, shape index: {}]   ;;  %s746_s4 = inlined_call_operand.vmem [shape: f32[1,128], index: 4, kind: input, shape index: {}]   ;;  %s747_s5 = inlined_call_operand.hbm [shape: f32[128,128], index: 5, kind: input, shape index: {}]   ;;  %s748_s6 = inlined_call_operand.vmem [shape: f32[1,128], index: 6, kind: input, shape index: {}]   ;;  %s749_s7 = inlined_call_operand.vmem [shape: s32[8,1], index: 7, kind: input, shape index: {}]   ;;  %s750_s8 = inlined_call_operand.hbm [shape: f32[8,128], index: 8, kind: output, shape index: {0}]   ;;  %s751_s9 = inlined_call_operand.vmem [shape: f32[8,1], index: 9, kind: output, shape index: {1}]  }
   0x1   :  { %16 = vsyncpa [#allocation6], 0 }
   0x2   :  { %17 = vsyncpa [#allocation4], 0  ;;  %s613_s30 = smov [#allocation5]   ;;  %s614_s11 = smov [#allocation2]  }
   0x3   :  { %s39_s10 = sshll.u32 %s613_s30, 4  ;;  %s25_s12 = sshll.u32 %s614_s11, 4  ;;  %s40_s10 = int_to_ptr.vmem [resolvable:$true] %s39_s10  ;;  %s26_s12 = int_to_ptr.vmem [resolvable:$true] %s25_s12 }
   0x4   :  { %s535_s13 = scalar_lea.vmem %s40_s10, 2048  ;;  %p540_p1 = scmp.lt.s32.totalorder %s40_s10, %s40_s10 }
   0x5   :  { %p536_p0 = scmp.ne.s32.totalorder %s40_s10, %s535_s13  ;;  %p541_p2 = scmp.lt.s32.totalorder %s535_s13, %s535_s13 }
   0x7   :  { %p542_p3 = por %p541_p2, %p540_p1 }
   0x9   :  { %p543_p4 = pnand %p542_p3, %p536_p0 }
   0xb   :  { %546 = shalt.err (!%p543_p4)
}
   0xc   :  { %s615_s14 = smov 128   ;;  %s616_s15 = smov 8  }
   0xd   :  { %45 = dma.hbm_to_vmem [thread:$0]  %s745_s3, 2048, %s40_s10, [#allocation6], %s615_s14, %s615_s14, %s616_s15  }
   0xe   :  { %s555_s18 = scalar_lea.vmem %s26_s12, 256  ;;  %p560_p6 = scmp.lt.s32.totalorder %s26_s12, %s26_s12 }
   0xf   :  { %p556_p5 = scmp.ne.s32.totalorder %s26_s12, %s555_s18  ;;  %p561_p7 = scmp.lt.s32.totalorder %s555_s18, %s555_s18 }
  0x11   :  { %p562_p8 = por %p561_p7, %p560_p6 }
  0x13   :  { %p563_p9 = pnand %p562_p8, %p556_p5 }
  0x15   :  { %566 = shalt.err (!%p563_p9)
}
  0x16   :  { %31 = dma.hbm_to_vmem [thread:$0]  %s743_s1, 256, %s26_s12, [#allocation3], %s615_s14, %s615_s14, %s616_s15  }
  0x17   :  { %s617_s21 = smov [#allocation7]  }
  0x18   :  { %s53_s22 = sshll.u32 %s617_s21, 4  ;;  %s54_s22 = int_to_ptr.vmem [resolvable:$true] %s53_s22 }
  0x19   :  { %s575_s23 = scalar_lea.vmem %s54_s22, 2048  ;;  %p580_p11 = scmp.lt.s32.totalorder %s54_s22, %s54_s22 }
  0x1a   :  { %p576_p10 = scmp.ne.s32.totalorder %s54_s22, %s575_s23  ;;  %p581_p12 = scmp.lt.s32.totalorder %s575_s23, %s575_s23 }
  0x1c   :  { %p582_p13 = por %p581_p12, %p580_p11 }
  0x1e   :  { %p583_p0 = pnand %p582_p13, %p576_p10 }
  0x20   :  { %586 = shalt.err (!%p583_p0)
}
  0x21   :  { %59 = dma.hbm_to_vmem [thread:$0]  %s747_s5, 2048, %s54_s22, [#allocation6], %s615_s14, %s615_s14, %s616_s15  }
  0x22   :  { %607 = dma.done.wait [#allocation3], 256  }
  0x23   :  { %608 = vsyncadd [#allocation3], 4294967040 }
  0x24   :  { %609 = dma.done.wait [#allocation6], 4096  }
  0x25   :  { %610 = vsyncadd [#allocation6], 4294963200  ;;  %v618_v0 = vmov 0.0   ;;  %vm619_vm0 = vmmov 0   ;;  %v75_v1 = vld [vmem:[#allocation2 + $0x8] sm:$0xff]  ;;  %v74_v2 = vld [vmem:[#allocation2] sm:$0xff]  ;;  %v346_v46 = vlaneseq }
  0x26   :  { %431 = vmatprep.subr.mxu0 %v618_v0  ;;  %435 = vmatprep.mubr.msk.f32.mxu0 %vm619_vm0, %v618_v0  ;;  %v73_v3 = vld [vmem:[%s742_s0] sm:$0xff]  ;;  %vm83_vm1 = vcmask 130048   ;;  %v173_v4 = vld [vmem:[#allocation5 + $0x78] sm:$0xff]  ;;  %v171_v6 = vld [vmem:[#allocation5 + $0x68] sm:$0xff]  ;;  %v620_v54 = vmov 0  }
  0x27   :  { %438 = vmatprep.subr.mxu1 %v618_v0  ;;  %470 = vmatprep.mubr.msk.f32.mxu1 %vm619_vm0, %v618_v0  ;;  %v172_v5 = vld [vmem:[#allocation5 + $0x70] sm:$0xff]  ;;  %v170_v7 = vld [vmem:[#allocation5 + $0x60] sm:$0xff]  ;;  %v169_v8 = vld [vmem:[#allocation5 + $0x58] sm:$0xff]  ;;  %v347_v47 = vand.u32 127, %v346_v46 }
  0x28   :  { %432 = vmatpush3.msra.mxu0 %v75_v1  ;;  %439 = vmatpush3.msra.mxu1 %v173_v4  ;;  %v168_v9 = vld [vmem:[#allocation5 + $0x50] sm:$0xff]  ;;  %v167_v10 = vld [vmem:[#allocation5 + $0x48] sm:$0xff]  ;;  %v166_v11 = vld [vmem:[#allocation5 + $0x40] sm:$0xff] }
  0x29   :  { %433 = vmatprep.subr.mxu0 %v618_v0  ;;  %440 = vmatprep.subr.mxu1 %v618_v0  ;;  %v165_v12 = vld [vmem:[#allocation5 + $0x38] sm:$0xff]  ;;  %v164_v13 = vld [vmem:[#allocation5 + $0x30] sm:$0xff]  ;;  %v163_v14 = vld [vmem:[#allocation5 + $0x28] sm:$0xff]  ;;  %vm348_vm2 = vcmp.lt.s32.totalorder %v347_v47, 6 }
  0x2a   :  { %434 = vmatpush3.msra.mxu0 %v74_v2  ;;  %441 = vmatpush3.msra.mxu1 %v172_v5  ;;  %v162_v15 = vld [vmem:[#allocation5 + $0x20] sm:$0xff]  ;;  %v161_v16 = vld [vmem:[#allocation5 + $0x18] sm:$0xff]  ;;  %v160_v17 = vld [vmem:[#allocation5 + $0x10] sm:$0xff] }
  0x2b   :  { %436 = vmatmul.mubr.msk.f32.vlgmr.msra.gmra.mxu0 %vm83_vm1, %v73_v3  ;;  %442 = vmatprep.subr.mxu1 %v618_v0  ;;  %v159_v18 = vld [vmem:[#allocation5 + $0x8] sm:$0xff]  ;;  %v158_v19 = vld [vmem:[#allocation5] sm:$0xff]  ;;  %v267_v20 = vld [vmem:[#allocation7 + $0x78] sm:$0xff] }
  0x2c   :  { %473 = vmatprep.subr.mxu0 %v618_v0  ;;  %443 = vmatpush3.msra.mxu1 %v171_v6  ;;  %v266_v21 = vld [vmem:[#allocation7 + $0x70] sm:$0xff]  ;;  %v265_v22 = vld [vmem:[#allocation7 + $0x68] sm:$0xff]  ;;  %v264_v23 = vld [vmem:[#allocation7 + $0x60] sm:$0xff] }
  0x2d   :  { %505 = vmatprep.mubr.msk.f32.mxu0 %vm619_vm0, %v618_v0  ;;  %444 = vmatprep.subr.mxu1 %v618_v0  ;;  %v263_v24 = vld [vmem:[#allocation7 + $0x58] sm:$0xff]  ;;  %v262_v25 = vld [vmem:[#allocation7 + $0x50] sm:$0xff]  ;;  %v261_v26 = vld [vmem:[#allocation7 + $0x48] sm:$0xff] }
  0x2e   :  { %445 = vmatpush3.msra.mxu1 %v170_v7  ;;  %474 = vmatpush3.msra.mxu0 %v267_v20  ;;  %v390_v27 = vld [vmem:[%s744_s2] ss:$0 sm:$0xff]  ;;  %v260_v32 = vld [vmem:[#allocation7 + $0x40] sm:$0xff]  ;;  %v259_v33 = vld [vmem:[#allocation7 + $0x38] sm:$0xff] }
  0x2f   :  { %446 = vmatprep.subr.mxu1 %v618_v0  ;;  %475 = vmatprep.subr.mxu0 %v618_v0  ;;  %v258_v34 = vld [vmem:[#allocation7 + $0x30] sm:$0xff]  ;;  %v257_v35 = vld [vmem:[#allocation7 + $0x28] sm:$0xff]  ;;  %v256_v36 = vld [vmem:[#allocation7 + $0x20] sm:$0xff] }
  0x30   :  { %447 = vmatpush3.msra.mxu1 %v169_v8  ;;  %476 = vmatpush3.msra.mxu0 %v266_v21  ;;  %v255_v37 = vld [vmem:[#allocation7 + $0x18] sm:$0xff]  ;;  %v254_v38 = vld [vmem:[#allocation7 + $0x10] sm:$0xff]  ;;  %v253_v39 = vld [vmem:[#allocation7 + $0x8] sm:$0xff] }
  0x31   :  { %448 = vmatprep.subr.mxu1 %v618_v0  ;;  %477 = vmatprep.subr.mxu0 %v618_v0  ;;  %v252_v40 = vld [vmem:[#allocation7] sm:$0xff]  ;;  %v392_v41 = vld [vmem:[%s746_s4] ss:$0 sm:$0xff] }
  0x32   :  { %449 = vmatpush3.msra.mxu1 %v168_v9  ;;  %478 = vmatpush3.msra.mxu0 %v265_v22  ;;  %v393_v48 = vld [vmem:[%s748_s6] ss:$0 sm:$0xff]  ;;  %s621_s6 = smov [#allocation8]  }
  0x33   :  { %450 = vmatprep.subr.mxu1 %v618_v0  ;;  %479 = vmatprep.subr.mxu0 %v618_v0  ;;  %v360_v53 = vld [vmem:[%s749_s7] sm:$0xff]  ;;  %s376_s7 = sshll.u32 %s621_s6, 4  ;;  %s377_s7 = int_to_ptr.vmem [resolvable:$true] %s376_s7 }
  0x34   :  { %451 = vmatpush3.msra.mxu1 %v167_v10  ;;  %480 = vmatpush3.msra.mxu0 %v264_v23  ;;  %s587_s30 = scalar_lea.vmem %s377_s7, 128  ;;  %p592_p2 = scmp.lt.s32.totalorder %s377_s7, %s377_s7 }
  0x35   :  { %452 = vmatprep.subr.mxu1 %v618_v0  ;;  %481 = vmatprep.subr.mxu0 %v618_v0  ;;  %p588_p1 = scmp.ne.s32.totalorder %s377_s7, %s587_s30  ;;  %p593_p3 = scmp.lt.s32.totalorder %s587_s30, %s587_s30 }
  0x36   :  { %453 = vmatpush3.msra.mxu1 %v166_v11  ;;  %482 = vmatpush3.msra.mxu0 %v263_v24 }
  0x37   :  { %454 = vmatprep.subr.mxu1 %v618_v0  ;;  %483 = vmatprep.subr.mxu0 %v618_v0  ;;  %p594_p4 = por %p593_p3, %p592_p2 }
  0x38   :  { %455 = vmatpush3.msra.mxu1 %v165_v12  ;;  %484 = vmatpush3.msra.mxu0 %v262_v25 }
  0x39   :  { %456 = vmatprep.subr.mxu1 %v618_v0  ;;  %485 = vmatprep.subr.mxu0 %v618_v0  ;;  %p595_p5 = pnand %p594_p4, %p588_p1 }
  0x3a   :  { %457 = vmatpush3.msra.mxu1 %v164_v13  ;;  %486 = vmatpush3.msra.mxu0 %v261_v26 }
  0x3b   :  { %458 = vmatprep.subr.mxu1 %v618_v0  ;;  %487 = vmatprep.subr.mxu0 %v618_v0 }
  0x3c   :  { %459 = vmatpush3.msra.mxu1 %v163_v14  ;;  %488 = vmatpush3.msra.mxu0 %v260_v32 }
  0x3d   :  { %460 = vmatprep.subr.mxu1 %v618_v0  ;;  %489 = vmatprep.subr.mxu0 %v618_v0 }
  0x3e   :  { %461 = vmatpush3.msra.mxu1 %v162_v15  ;;  %490 = vmatpush3.msra.mxu0 %v259_v33 }
  0x3f   :  { %462 = vmatprep.subr.mxu1 %v618_v0  ;;  %491 = vmatprep.subr.mxu0 %v618_v0 }
  0x40   :  { %463 = vmatpush3.msra.mxu1 %v161_v16  ;;  %492 = vmatpush3.msra.mxu0 %v258_v34 }
  0x41   :  { %464 = vmatprep.subr.mxu1 %v618_v0  ;;  %493 = vmatprep.subr.mxu0 %v618_v0 }
  0x42   :  { %465 = vmatpush3.msra.mxu1 %v160_v17  ;;  %494 = vmatpush3.msra.mxu0 %v257_v35 }
  0x43   :  { %466 = vmatprep.subr.mxu1 %v618_v0  ;;  %495 = vmatprep.subr.mxu0 %v618_v0 }
  0x44   :  { %467 = vmatpush3.msra.mxu1 %v159_v18  ;;  %496 = vmatpush3.msra.mxu0 %v256_v36 }
  0x45   :  { %468 = vmatprep.subr.mxu1 %v618_v0  ;;  %497 = vmatprep.subr.mxu0 %v618_v0 }
  0x46   :  { %469 = vmatpush3.msra.mxu1 %v158_v19  ;;  %498 = vmatpush3.msra.mxu0 %v255_v37 }
  0x47   :  { %499 = vmatprep.subr.mxu0 %v618_v0  ;;  %517 = vset.pattern.permute.xlu1 %v620_v54 }
  0x48   :  { %500 = vmatpush3.msra.mxu0 %v254_v38  ;;  %518 = vset.pattern.permute.xlu0 %v620_v54 }
  0x49   :  { %501 = vmatprep.subr.mxu0 %v618_v0  ;;  %362 = vperm.xlu1 %517, %v360_v53  }
  0x4a   :  { %502 = vmatpush3.msra.mxu0 %v253_v39 }
  0x4b   :  { %503 = vmatprep.subr.mxu0 %v618_v0 }
  0x4c   :  { %504 = vmatpush3.msra.mxu0 %v252_v40 }
  0xc4   :  { %v363_v60 = vpop.permute.xlu1 %362 }
  0xc5   :  { %vm364_vm3 = vcmp.eq.s32.totalorder %v347_v47, %v363_v60 }
  0xeb   :  { %v153_v28 = vpop.f32.mrf.mxu0 }
  0xec   :  { %v154_v29 = vadd.f32 %v390_v27, %v153_v28 }
  0xed   :  { %v437_v30 = vpop.f32.mrf.mxu0 }
  0xee   :  { %519 = vtanh.f32 %v154_v29 }
  0xfb   :  { %v520_v31 = vpop.eup %519 }
  0xfc   :  { %471 = vmatmul.mubr.f32.vlgmr.msra.gmra.mxu1 %v520_v31 }
 0x1bc   :  { %v247_v42 = vpop.f32.mrf.mxu1 }
 0x1bd   :  { %v248_v43 = vadd.f32 %v392_v41, %v247_v42 }
 0x1be   :  { %v472_v44 = vpop.f32.mrf.mxu1 }
 0x1bf   :  { %521 = vtanh.f32 %v248_v43 }
 0x1cc   :  { %v522_v45 = vpop.eup %521 }
 0x1cd   :  { %506 = vmatmul.mubr.f32.vlgmr.msra.gmra.mxu0 %v522_v45 }
 0x28d   :  { %v341_v49 = vpop.f32.mrf.mxu0 }
 0x28e   :  { %v342_v50 = vadd.f32 %v393_v48, %v341_v49 }
 0x28f   :  { %v507_v51 = vpop.f32.mrf.mxu0 }
 0x290   :  { %345 = vst [vmem:[#allocation8] sm:$0xff] %v342_v50  ;;  %v349_v52 = vsel %vm348_vm2, %v342_v50, -1e+30 }
 0x291   :  { %350 = vmax.xlane.f32.xlu0 %v349_v52 }
 0x31a   :  { %v351_v55 = vpop.xlane.xlu0 %350 }
 0x31b   :  { %v352_v56 = vsub.f32 %v349_v52, %v351_v55 }
 0x31d   :  { %v353_v57 = vmul.f32 1.442695, %v352_v56 }
 0x31f   :  { %523 = vpow2.f32 %v353_v57 }
 0x32c   :  { %v524_v58 = vpop.eup %523 }
 0x32d   :  { %355 = vadd.xlane.f32.xlu0 %v524_v58 }
 0x3b6   :  { %v356_v59 = vpop.xlane.xlu0 %355 }
 0x3b7   :  { %525 = vlog2.f32 %v356_v59 }
 0x3c4   :  { %v526_v61 = vpop.eup %525 }
 0x3c5   :  { %v358_v62 = vmul.f32 0.6931472, %v526_v61 }
 0x3c7   :  { %v359_v63 = vsub.f32 %v352_v56, %v358_v62 }
 0x3c9   :  { %v365_v0 = vsel %vm364_vm3, %v359_v63, 0.0 }
 0x3ca   :  { %366 = vadd.xlane.f32.xlu1 %v365_v0 }
 0x3cb   :  { %598 = shalt.err (!%p595_p5)
}
 0x3cc   :  { %379 = dma.vmem_to_hbm [thread:$0]  %s377_s7, 128, %s750_s8, [#allocation4]   ;;  %vm368_vm4 = vcmask 7168  }
 0x453   :  { %v367_v1 = vpop.xlane.xlu1 %366 }
 0x454   :  { %369 = vst.msk [vmem:[%s751_s9] sm:$0xff] %vm368_vm4, %v367_v1 }
 0x455   :  { %611 = dma.done.wait [#allocation4], 128  }
 0x456   :  { %612 = vsyncadd [#allocation4], 4294967168 }
 0x457   :  { %387 = vsyncpa [#allocation3], 1 }
 0x458   :  { %388 = vsyncpa [#allocation6], 1 }
 0x459   :  { %389 = vsyncpa [#allocation4], 1 }

</bundles_post_ra>
